<compile_context>
chip_gen: v7x
topology: tpu7x:2x2x1
jax: 0.10.0
libtpu: 0.0.40
codegen_flags: <defaults>
</compile_context>

<pallas_src>
import functools

import jax
import jax.numpy as jnp
from jax.experimental import pallas as pl
from jax.experimental.pallas import tpu as pltpu

_LEAKY_SLOPE = 0.01  # nn.LeakyReLU default
_PPAR = pltpu.CompilerParams(dimension_semantics=("parallel",))


def _leaky(y):
    return jnp.where(y >= 0, y, _LEAKY_SLOPE * y)


def _row_tile(n, target=2048):
    """Large row tile to amortize the ~0.35us per-grid-step overhead."""
    return n if n <= target else target


# ----------------------------------------------------------------------------
# Kernel 1: feature_align (4 Linears + LeakyReLU) -> one 128-lane-dense bf16 slab
# ----------------------------------------------------------------------------
def _align_kernel(des_ref, tw_ref, np_ref, cp_ref,
                  wd_ref, wt_ref, wn_ref, wc_ref, b_ref, o_ref):
    # des/tweets: cast to bf16 in-kernel right before the dot (weights are bf16).
    acc = jnp.dot(des_ref[...].astype(jnp.bfloat16), wd_ref[...],
                  preferred_element_type=jnp.float32)
    acc += jnp.dot(tw_ref[...].astype(jnp.bfloat16), wt_ref[...],
                   preferred_element_type=jnp.float32)
    # num/cat props stay f32 (tiny K, precision-sensitive count features).
    acc += jnp.dot(np_ref[...], wn_ref[...], preferred_element_type=jnp.float32)
    acc += jnp.dot(cp_ref[...], wc_ref[...], preferred_element_type=jnp.float32)
    y = _leaky(acc + b_ref[...])              # f32 epilogue (v5e has no bf16 VPU)
    o_ref[...] = y.astype(o_ref.dtype)        # bf16 store


def pallas_feature_align(des, tweets, num_prop, cat_prop,
                         wd_band, wt_band, wn_band, wc_band, bias, *, blk=2048):
    """Fused feature_align_new_fea (node-level branches).  The weights are
    zero-band-padded to (K, 4*align) so the sum of the four dots is already the
    [des_a | tweet_a | num_a | cat_a] layout -- no lane concat.  Output bf16."""
    n = des.shape[0]
    tile = _row_tile(n, blk)
    a4 = wd_band.shape[1]
    return pl.pallas_call(
        _align_kernel,
        out_shape=jax.ShapeDtypeStruct((n, a4), jnp.bfloat16),
        grid=(pl.cdiv(n, tile),),
        in_specs=[
            pl.BlockSpec((tile, des.shape[1]), lambda i: (i, 0)),
            pl.BlockSpec((tile, tweets.shape[1]), lambda i: (i, 0)),
            pl.BlockSpec((tile, num_prop.shape[1]), lambda i: (i, 0)),
            pl.BlockSpec((tile, cat_prop.shape[1]), lambda i: (i, 0)),
            pl.BlockSpec(wd_band.shape, lambda i: (0, 0)),
            pl.BlockSpec(wt_band.shape, lambda i: (0, 0)),
            pl.BlockSpec(wn_band.shape, lambda i: (0, 0)),
            pl.BlockSpec(wc_band.shape, lambda i: (0, 0)),
            pl.BlockSpec((1, a4), lambda i: (0, 0)),
        ],
        out_specs=pl.BlockSpec((tile, a4), lambda i: (i, 0)),
        compiler_params=pltpu.CompilerParams(
            dimension_semantics=("parallel",),
            vmem_limit_bytes=40 * 1024 * 1024),  # tile=2048, f32 inputs ~28 MB
    )(des, tweets, num_prop, cat_prop, wd_band, wt_band, wn_band, wc_band, bias)


# ----------------------------------------------------------------------------
# Kernel 2: three MoE stand-in heads fused via band weights -> (n, 3*D) slab
# ----------------------------------------------------------------------------
def _moe_kernel(agg_ref, invdeg_ref, al_ref, nh_ref,
                wg_ref, wal_ref, wnh_ref, b_ref, o_ref):
    # h_gnn = aligned + agg/deg; the `aligned` self-term is folded into wal_band.
    hg = agg_ref[...] * invdeg_ref[...]                           # (tile, 4a) f32
    acc = jnp.dot(hg, wg_ref[...], preferred_element_type=jnp.float32)
    acc += jnp.dot(al_ref[...], wal_ref[...], preferred_element_type=jnp.float32)
    acc += jnp.dot(nh_ref[...], wnh_ref[...], preferred_element_type=jnp.float32)
    o_ref[...] = _leaky(acc + b_ref[...])                          # (tile, 3D) f32


def pallas_moe_heads(agg, inv_deg, aligned, nh_a,
                     wg_band, wal_band, wnh_band, bias, *, blk=2048):
    n = agg.shape[0]
    tile = _row_tile(n, blk)
    d3 = wg_band.shape[1]
    return pl.pallas_call(
        _moe_kernel,
        out_shape=jax.ShapeDtypeStruct((n, d3), jnp.float32),
        grid=(pl.cdiv(n, tile),),
        in_specs=[
            pl.BlockSpec((tile, agg.shape[1]), lambda i: (i, 0)),
            pl.BlockSpec((tile, 1), lambda i: (i, 0)),
            pl.BlockSpec((tile, aligned.shape[1]), lambda i: (i, 0)),
            pl.BlockSpec((tile, nh_a.shape[1]), lambda i: (i, 0)),
            pl.BlockSpec(wg_band.shape, lambda i: (0, 0)),
            pl.BlockSpec(wal_band.shape, lambda i: (0, 0)),
            pl.BlockSpec(wnh_band.shape, lambda i: (0, 0)),
            pl.BlockSpec((1, d3), lambda i: (0, 0)),
        ],
        out_specs=pl.BlockSpec((tile, d3), lambda i: (i, 0)),
        compiler_params=_PPAR,
    )(agg, inv_deg, aligned, nh_a, wg_band, wal_band, wnh_band, bias)


# ----------------------------------------------------------------------------
# Kernel 3: bn1 apply + 3-token fusion attention + FixedPooling(6) -> 128-lane slab
# ----------------------------------------------------------------------------
def _fusion_kernel(x_ref, sc_ref, sh_ref, wqkv_ref, p_ref, o_ref, *, d, scale):
    x = x_ref[...] * sc_ref[...] + sh_ref[...]          # bn1 applied, (tile, 3d) f32
    # Fused Q/K/V: one (tile,3d) @ (3d,9d) matmul vs block-diagonal weight.
    qkv = jnp.dot(x, wqkv_ref[...], preferred_element_type=jnp.float32)
    q = [qkv[:, t * d:(t + 1) * d] for t in range(3)]
    k = [qkv[:, (3 + t) * d:(4 + t) * d] for t in range(3)]
    v = [qkv[:, (6 + t) * d:(7 + t) * d] for t in range(3)]

    y_parts, att_cols = [], []
    for i in range(3):                                   # 3x3 attention, unrolled
        s = [jnp.sum(q[i] * k[j], axis=-1, keepdims=True) * scale for j in range(3)]
        m = jnp.maximum(jnp.maximum(s[0], s[1]), s[2])
        p = [jnp.exp(sj - m) for sj in s]
        inv = pl.reciprocal(p[0] + p[1] + p[2], approx=True)
        a = [pj * inv for pj in p]                       # softmax weights, 3 x (tile,1)
        att_cols += a
        y_parts.append(a[0] * v[0] + a[1] * v[1] + a[2] * v[2])     # (tile, d)

    # FixedPooling(6) on the 3x3 map == zero-pad to 6x6 (pool kernel is 1x1); the
    # scatter a_ij -> flat column 6i+j (plus lane padding) is one tiny placement
    # matmul instead of a 10-piece zero concat.
    att9 = jnp.concatenate(att_cols, axis=-1)                        # (tile, 9)
    pooled = jnp.dot(att9, p_ref[...], preferred_element_type=jnp.float32)
    o_ref[...] = jnp.concatenate(y_parts + [pooled], axis=-1)        # dense 128-lane store


def pallas_fusion_feats(moe_out, sc3, sh3, wqkv, pmat, *, blk=2048):
    """LModel stand-in (scaled-dot-product self-attention over the 3 modality
    tokens) fused with the bn1 apply and FixedPooling; emits a 128-lane-padded
    feats slab [y.reshape(n, 3D) | pooled attention (36) | zeros]."""
    # TODO(synk): LModel source was not provided; plain SDPA stand-in.
    n, td = moe_out.shape
    d = td // 3
    tile = _row_tile(n, blk)
    fdim = td + pmat.shape[1]          # = 128 for output_size=16
    return pl.pallas_call(
        functools.partial(_fusion_kernel, d=d, scale=1.0 / (d ** 0.5)),
        out_shape=jax.ShapeDtypeStruct((n, fdim), jnp.float32),
        grid=(pl.cdiv(n, tile),),
        in_specs=[
            pl.BlockSpec((tile, td), lambda i: (i, 0)),
            pl.BlockSpec((1, td), lambda i: (0, 0)),
            pl.BlockSpec((1, td), lambda i: (0, 0)),
            pl.BlockSpec(wqkv.shape, lambda i: (0, 0)),
            pl.BlockSpec(pmat.shape, lambda i: (0, 0)),
        ],
        out_specs=pl.BlockSpec((tile, fdim), lambda i: (i, 0)),
        compiler_params=_PPAR,
    )(moe_out, sc3, sh3, wqkv, pmat)


# ----------------------------------------------------------------------------
# Plain-JAX glue
# ----------------------------------------------------------------------------
def batchnorm_scale_shift(x2d, gamma, beta, eps=1e-5):
    """Training-mode BatchNorm1d batch stats; returns per-feature (scale, shift)."""
    mean = jnp.mean(x2d, axis=0)
    var = jnp.mean((x2d - mean) ** 2, axis=0)        # biased, as PyTorch uses
    scale = gamma / jnp.sqrt(var + eps)
    shift = beta - mean * scale
    return scale, shift


# ----------------------------------------------------------------------------
# Model
# ----------------------------------------------------------------------------
class AllInOne1NewFeaPallas:
    def __init__(self, output_size=16, align_size=32, key=None):
        self.output_size = d = output_size
        self.align_size = a = align_size
        key = jax.random.PRNGKey(42) if key is None else key
        ks = iter(jax.random.split(key, 24))

        def lin(i, o):
            w = 0.05 * jax.random.normal(next(ks), (i, o), jnp.float32)
            b = 0.05 * jax.random.normal(next(ks), (o,), jnp.float32)
            return w, b

        def embed(w, row0, col0, shape, dtype=jnp.float32):
            z = jnp.zeros(shape, dtype)
            return z.at[row0:row0 + w.shape[0], col0:col0 + w.shape[1]].set(w.astype(dtype))

        # ---- feature_align_new_fea ----
        w_des, b_des = lin(768, a)
        w_tw, b_tw = lin(768, a)
        w_np, b_np = lin(27, a)
        w_cp, b_cp = lin(11, a)
        self.w_nh, self.b_nh = lin(9, a)              # tiny K=9 branch -> plain XLA
        # zero-band-padded weights -> 128-lane-dense output sum, no lane concat
        self.wd_band = embed(w_des, 0, 0 * a, (768, 4 * a), jnp.bfloat16)
        self.wt_band = embed(w_tw, 0, 1 * a, (768, 4 * a), jnp.bfloat16)
        self.wn_band = embed(w_np, 0, 2 * a, (27, 4 * a), jnp.float32)
        self.wc_band = embed(w_cp, 0, 3 * a, (11, 4 * a), jnp.float32)
        self.align_bias = jnp.concatenate([b_des, b_tw, b_np, b_cp]).reshape(1, 4 * a)

        # ---- MoE stand-in heads (gnn / text / cat) ----
        w_gnn, b_gnn = lin(4 * a, d)                  # BotRGCN_fmoe stand-in
        w_txt, b_txt = lin(2 * a, d)                  # MoE(MLPclassifier) stand-in
        w_cat, b_cat = lin(2 * a, d)                  # DeeProBot_MoE stand-in: [nh_a | cat_a]
        self.wg_band = embed(w_gnn, 0, 0, (4 * a, 3 * d), jnp.float32)   # on agg/deg
        wal = jnp.zeros((4 * a, 3 * d), jnp.float32)
        wal = wal.at[:, 0:d].set(w_gnn)                                  # gnn self-term
        wal = wal.at[0:2 * a, d:2 * d].set(w_txt)                        # text head [des|tw]
        wal = wal.at[3 * a:4 * a, 2 * d:3 * d].set(w_cat[a:])            # cat head (cat_a part)
        self.wal_band = wal.astype(jnp.bfloat16)                         # matches bf16 `aligned`
        self.wnh_band = embed(w_cat[:a], 0, 2 * d, (a, 3 * d), jnp.float32)
        self.moe_bias = jnp.concatenate([b_gnn, b_txt, b_cat]).reshape(1, 3 * d)

        # ---- fusion (LModel stand-in) ----
        w_q, _ = lin(d, d)
        w_k, _ = lin(d, d)
        w_v, _ = lin(d, d)

        def bd3(w):
            z = jnp.zeros((3 * d, 3 * d), jnp.float32)
            for t in range(3):
                z = z.at[t * d:(t + 1) * d, t * d:(t + 1) * d].set(w)
            return z

        self.wqkv = jnp.concatenate([bd3(w_q), bd3(w_k), bd3(w_v)], axis=-1)   # (3d, 9d)

        # FixedPooling placement: a_ij -> flat 6x6 column 6i+j; lane-padded to 128.
        fdim = 3 * d + 36
        self.fdim = fdim
        self.fdim_pad = ((fdim + 127) // 128) * 128
        pw = self.fdim_pad - 3 * d
        pmat = jnp.zeros((9, pw), jnp.float32)
        for i in range(3):
            for j in range(3):
                pmat = pmat.at[3 * i + j, 6 * i + j].set(1.0)
        self.pmat = pmat

        # batchnorms (weight=1, bias=0 init as nn.BatchNorm1d); bn2 extended to the
        # padded width (padding columns are exactly 0 and stay 0 after the affine).
        self.bn1_g = jnp.ones((d,), jnp.float32)
        self.bn1_b = jnp.zeros((d,), jnp.float32)
        self.bn2_g = jnp.ones((self.fdim_pad,), jnp.float32)
        self.bn2_b = jnp.zeros((self.fdim_pad,), jnp.float32)

        # classifier: zero rows for the padded lanes -> identical to the 84-wide head
        w_cls, self.b_cls = lin(fdim, 2)
        self.w_cls = jnp.zeros((self.fdim_pad, 2), jnp.float32).at[:fdim].set(w_cls)

    def __call__(self, des, tweets, num_prop, cat_prop, num_for_h,
                 edge_index, edge_type):
        n = des.shape[0]
        a, d = self.align_size, self.output_size

        # ---- feature_align: fused, bf16 128-lane output [des|tw|np|cp] ----
        aligned = pallas_feature_align(
            des, tweets, num_prop, cat_prop,
            self.wd_band, self.wt_band, self.wn_band, self.wc_band, self.align_bias)
        # 5th align branch (num_for_h, K=9): tiny -> plain XLA, f32.
        nh_a = _leaky(num_for_h @ self.w_nh + self.b_nh)

        # ---- gnn_moe aggregation glue ----
        # TODO(synk): BotRGCN_fmoe (relational GCN layers + MoE routing) source not
        # provided; stand-in = mean-neighbour aggregation (edge_type ignored) +
        # fused Linear head.  Degree normalisation + self-term are done in-kernel.
        src, dst = edge_index[0], edge_index[1]
        agg = jnp.zeros((n, 4 * a), jnp.float32).at[dst].add(aligned[src].astype(jnp.float32))
        deg = jnp.zeros((n,), jnp.float32).at[dst].add(1.0)
        inv_deg = (1.0 / jnp.maximum(deg, 1.0)).reshape(n, 1)

        # ---- text_moe / cat_moe / gnn head: one fused band-weight kernel ----
        # TODO(synk): MoE(MLPclassifier) / DeeProBot_MoE sources not provided;
        # stand-ins = single Linear heads.
        moe_out = pallas_moe_heads(agg, inv_deg, aligned, nh_a,
                                   self.wg_band, self.wal_band, self.wnh_band,
                                   self.moe_bias)                    # (N, 3D) = [gnn|text|cat]
        exp_loss = jnp.float32(0.0)   # TODO(synk): MoE load-balancing losses not reproduced.

        # ---- bn1 (batch stats in XLA; scale/shift applied inside the fusion kernel) ----
        sc1, sh1 = batchnorm_scale_shift(moe_out.reshape(-1, d), self.bn1_g, self.bn1_b)
        sc3 = jnp.tile(sc1, 3).reshape(1, 3 * d)
        sh3 = jnp.tile(sh1, 3).reshape(1, 3 * d)
        # NOTE: self.dropout(out_tensor) result is discarded in the original forward.

        # ---- fusion attention + FixedPooling(6), 128-lane-dense feats slab ----
        feats = pallas_fusion_feats(moe_out, sc3, sh3, self.wqkv, self.pmat)

        # ---- bn2 + classifier: tiny GEMV, plain XLA (padded lanes contribute 0) ----
        sc2, sh2 = batchnorm_scale_shift(feats, self.bn2_g, self.bn2_b)
        logits = (feats * sc2 + sh2) @ self.w_cls + self.b_cls
        return logits, exp_loss


# ----------------------------------------------------------------------------
if __name__ == "__main__":
    key = jax.random.PRNGKey(0)
    k1, k2, k3, k4, k5, k6, k7 = jax.random.split(key, 7)

    N, E = 16, 40                     # small stand-in (orig: ~229k nodes)
    des = jax.random.normal(k1, (N, 768), jnp.float32)
    tweets = jax.random.normal(k2, (N, 768), jnp.float32)
    num_prop = jax.random.normal(k3, (N, 27), jnp.float32)
    cat_prop = jax.random.normal(k4, (N, 11), jnp.float32)
    num_for_h = jax.random.normal(k5, (N, 9), jnp.float32)
    edge_index = jax.random.randint(k6, (2, E), 0, N)
    edge_type = jax.random.randint(k7, (E,), 0, 2)

    model = AllInOne1NewFeaPallas(output_size=16, align_size=32)
    logits, exp_loss = model(des, tweets, num_prop, cat_prop, num_for_h,
                             edge_index, edge_type)
    jax.block_until_ready((logits, exp_loss))
    assert logits.shape == (N, 2), logits.shape
    print("KERNEL_OK")
</pallas_src>

<mosaic_0001>
module attributes {stable_mosaic.version = 11 : i64} {
  func.func @_align_kernel(%arg0: i32, %arg1: memref<16x768xf32, #tpu.memory_space<vmem>>, %arg2: memref<16x768xf32, #tpu.memory_space<vmem>>, %arg3: memref<16x27xf32, #tpu.memory_space<vmem>>, %arg4: memref<16x11xf32, #tpu.memory_space<vmem>>, %arg5: memref<768x128xbf16, #tpu.memory_space<vmem>>, %arg6: memref<768x128xbf16, #tpu.memory_space<vmem>>, %arg7: memref<27x128xf32, #tpu.memory_space<vmem>>, %arg8: memref<11x128xf32, #tpu.memory_space<vmem>>, %arg9: memref<1x128xf32, #tpu.memory_space<vmem>>, %arg10: memref<16x128xbf16, #tpu.memory_space<vmem>>) attributes {dimension_semantics = [#tpu.dimension_semantics<parallel>], iteration_bounds = array<i64: 1>, scalar_prefetch = 0 : i64, scratch_operands = 0 : i64, tpu.core_type = #tpu.core_type<tc>, window_params = [{transform_indices = @transform_0, window_bounds = array<i64: 16, 768>}, {transform_indices = @transform_1, window_bounds = array<i64: 16, 768>}, {transform_indices = @transform_2, window_bounds = array<i64: 16, 27>}, {transform_indices = @transform_3, window_bounds = array<i64: 16, 11>}, {pipeline_mode = #tpu.pipeline_mode<synchronous>, transform_indices = @transform_4, window_bounds = array<i64: 768, 128>}, {pipeline_mode = #tpu.pipeline_mode<synchronous>, transform_indices = @transform_5, window_bounds = array<i64: 768, 128>}, {pipeline_mode = #tpu.pipeline_mode<synchronous>, transform_indices = @transform_6, window_bounds = array<i64: 27, 128>}, {pipeline_mode = #tpu.pipeline_mode<synchronous>, transform_indices = @transform_7, window_bounds = array<i64: 11, 128>}, {pipeline_mode = #tpu.pipeline_mode<synchronous>, transform_indices = @transform_8, window_bounds = array<i64: 1, 128>}, {transform_indices = @transform_9, window_bounds = array<i64: 16, 128>}]} {
    %c0 = arith.constant 0 : index
    %c0_0 = arith.constant 0 : index
    %0 = vector.load %arg1[%c0, %c0_0] : memref<16x768xf32, #tpu.memory_space<vmem>>, vector<16x768xf32>
    %1 = arith.truncf %0 : vector<16x768xf32> to vector<16x768xbf16>
    %c0_1 = arith.constant 0 : index
    %c0_2 = arith.constant 0 : index
    %2 = vector.load %arg5[%c0_1, %c0_2] : memref<768x128xbf16, #tpu.memory_space<vmem>>, vector<768x128xbf16>
    %cst = arith.constant dense<0.000000e+00> : vector<16x128xf32>
    %3 = tpu.matmul %1, %2, %cst {dimension_numbers = #tpu.dot_dimension_numbers<[1], [0], [0], [1], [0, 0, 1, 1], [], []>} : vector<16x768xbf16>, vector<768x128xbf16>, vector<16x128xf32> -> vector<16x128xf32>
    %c0_3 = arith.constant 0 : index
    %c0_4 = arith.constant 0 : index
    %4 = vector.load %arg2[%c0_3, %c0_4] : memref<16x768xf32, #tpu.memory_space<vmem>>, vector<16x768xf32>
    %5 = arith.truncf %4 : vector<16x768xf32> to vector<16x768xbf16>
    %c0_5 = arith.constant 0 : index
    %c0_6 = arith.constant 0 : index
    %6 = vector.load %arg6[%c0_5, %c0_6] : memref<768x128xbf16, #tpu.memory_space<vmem>>, vector<768x128xbf16>
    %cst_7 = arith.constant dense<0.000000e+00> : vector<16x128xf32>
    %7 = tpu.matmul %5, %6, %cst_7 {dimension_numbers = #tpu.dot_dimension_numbers<[1], [0], [0], [1], [0, 0, 1, 1], [], []>} : vector<16x768xbf16>, vector<768x128xbf16>, vector<16x128xf32> -> vector<16x128xf32>
    %8 = arith.addf %3, %7 : vector<16x128xf32>
    %c0_8 = arith.constant 0 : index
    %c0_9 = arith.constant 0 : index
    %9 = vector.load %arg3[%c0_8, %c0_9] : memref<16x27xf32, #tpu.memory_space<vmem>>, vector<16x27xf32>
    %c0_10 = arith.constant 0 : index
    %c0_11 = arith.constant 0 : index
    %10 = vector.load %arg7[%c0_10, %c0_11] : memref<27x128xf32, #tpu.memory_space<vmem>>, vector<27x128xf32>
    %cst_12 = arith.constant dense<0.000000e+00> : vector<16x128xf32>
    %11 = tpu.matmul %9, %10, %cst_12 {dimension_numbers = #tpu.dot_dimension_numbers<[1], [0], [0], [1], [0, 0, 1, 1], [], []>} : vector<16x27xf32>, vector<27x128xf32>, vector<16x128xf32> -> vector<16x128xf32>
    %12 = arith.addf %8, %11 : vector<16x128xf32>
    %c0_13 = arith.constant 0 : index
    %c0_14 = arith.constant 0 : index
    %13 = vector.load %arg4[%c0_13, %c0_14] : memref<16x11xf32, #tpu.memory_space<vmem>>, vector<16x11xf32>
    %c0_15 = arith.constant 0 : index
    %c0_16 = arith.constant 0 : index
    %14 = vector.load %arg8[%c0_15, %c0_16] : memref<11x128xf32, #tpu.memory_space<vmem>>, vector<11x128xf32>
    %cst_17 = arith.constant dense<0.000000e+00> : vector<16x128xf32>
    %15 = tpu.matmul %13, %14, %cst_17 {dimension_numbers = #tpu.dot_dimension_numbers<[1], [0], [0], [1], [0, 0, 1, 1], [], []>} : vector<16x11xf32>, vector<11x128xf32>, vector<16x128xf32> -> vector<16x128xf32>
    %16 = arith.addf %12, %15 : vector<16x128xf32>
    %c0_18 = arith.constant 0 : index
    %c0_19 = arith.constant 0 : index
    %17 = vector.load %arg9[%c0_18, %c0_19] : memref<1x128xf32, #tpu.memory_space<vmem>>, vector<1x128xf32>
    %18 = vector.broadcast %17 : vector<1x128xf32> to vector<16x128xf32>
    %19 = arith.addf %16, %18 : vector<16x128xf32>
    %cst_20 = arith.constant 0.000000e+00 : f32
    %20 = vector.broadcast %cst_20 : f32 to vector<16x128xf32>
    %21 = arith.cmpf oge, %19, %20 : vector<16x128xf32>
    %cst_21 = arith.constant 0.00999999977 : f32
    %22 = vector.broadcast %cst_21 : f32 to vector<16x128xf32>
    %23 = arith.mulf %22, %19 : vector<16x128xf32>
    %24 = arith.select %21, %19, %23 : vector<16x128xi1>, vector<16x128xf32>
    %25 = arith.truncf %24 : vector<16x128xf32> to vector<16x128xbf16>
    %c0_22 = arith.constant 0 : index
    %c0_23 = arith.constant 0 : index
    %26 = vector.load %arg10[%c0_22, %c0_23] : memref<16x128xbf16, #tpu.memory_space<vmem>>, vector<16x128xbf16>
    tpu.vector_store %arg10[%c0_22, %c0_23], %25 {strides = array<i32>} : memref<16x128xbf16, #tpu.memory_space<vmem>>, vector<16x128xbf16>,
    return
  }
  func.func @transform_0(%arg0: i32) -> (i32, i32) {
    %c0_i32 = arith.constant 0 : i32
    %c0_i32_0 = arith.constant 0 : i32
    return %arg0, %c0_i32 : i32, i32
  }
  func.func @transform_1(%arg0: i32) -> (i32, i32) {
    %c0_i32 = arith.constant 0 : i32
    %c0_i32_0 = arith.constant 0 : i32
    return %arg0, %c0_i32 : i32, i32
  }
  func.func @transform_2(%arg0: i32) -> (i32, i32) {
    %c0_i32 = arith.constant 0 : i32
    %c0_i32_0 = arith.constant 0 : i32
    return %arg0, %c0_i32 : i32, i32
  }
  func.func @transform_3(%arg0: i32) -> (i32, i32) {
    %c0_i32 = arith.constant 0 : i32
    %c0_i32_0 = arith.constant 0 : i32
    return %arg0, %c0_i32 : i32, i32
  }
  func.func @transform_4(%arg0: i32) -> (i32, i32) {
    %c0_i32 = arith.constant 0 : i32
    %c0_i32_0 = arith.constant 0 : i32
    %c0_i32_1 = arith.constant 0 : i32
    return %c0_i32, %c0_i32_0 : i32, i32
  }
  func.func @transform_5(%arg0: i32) -> (i32, i32) {
    %c0_i32 = arith.constant 0 : i32
    %c0_i32_0 = arith.constant 0 : i32
    %c0_i32_1 = arith.constant 0 : i32
    return %c0_i32, %c0_i32_0 : i32, i32
  }
  func.func @transform_6(%arg0: i32) -> (i32, i32) {
    %c0_i32 = arith.constant 0 : i32
    %c0_i32_0 = arith.constant 0 : i32
    %c0_i32_1 = arith.constant 0 : i32
    return %c0_i32, %c0_i32_0 : i32, i32
  }
  func.func @transform_7(%arg0: i32) -> (i32, i32) {
    %c0_i32 = arith.constant 0 : i32
    %c0_i32_0 = arith.constant 0 : i32
    %c0_i32_1 = arith.constant 0 : i32
    return %c0_i32, %c0_i32_0 : i32, i32
  }
  func.func @transform_8(%arg0: i32) -> (i32, i32) {
    %c0_i32 = arith.constant 0 : i32
    %c0_i32_0 = arith.constant 0 : i32
    %c0_i32_1 = arith.constant 0 : i32
    return %c0_i32, %c0_i32_0 : i32, i32
  }
  func.func @transform_9(%arg0: i32) -> (i32, i32) {
    %c0_i32 = arith.constant 0 : i32
    %c0_i32_0 = arith.constant 0 : i32
    return %arg0, %c0_i32 : i32, i32
  }
}

</mosaic_0001>

<bundles_post_ra>
// kernel: tpu_custom_call.1
= control target key start
LH: loop header
LB: loop body
LE: loop exit
PB: predicated region body
PF: predicated region fallthrough
CT: control target
= control target key end

     0   :  { %14 = vsyncpa [#allocation3], 0  ;;  %s2220_s0 = inlined_call_operand.hbm [shape: f32[16,768], index: 0, kind: input, shape index: {}]   ;;  %s2221_s1 = inlined_call_operand.hbm [shape: f32[16,768], index: 1, kind: input, shape index: {}]   ;;  %s2222_s2 = inlined_call_operand.hbm [shape: f32[16,27], index: 2, kind: input, shape index: {}]   ;;  %s2223_s3 = inlined_call_operand.hbm [shape: f32[16,11], index: 3, kind: input, shape index: {}]   ;;  %s2224_s4 = inlined_call_operand.hbm [shape: bf16[768,128], index: 4, kind: input, shape index: {}]   ;;  %s2225_s5 = inlined_call_operand.hbm [shape: bf16[768,128], index: 5, kind: input, shape index: {}]   ;;  %s2226_s6 = inlined_call_operand.hbm [shape: f32[27,128], index: 6, kind: input, shape index: {}]   ;;  %s2227_s7 = inlined_call_operand.vmem [shape: f32[11,128], index: 7, kind: input, shape index: {}]   ;;  %s2228_s8 = inlined_call_operand.vmem [shape: f32[1,128], index: 8, kind: input, shape index: {}]   ;;  %s2229_s9 = inlined_call_operand.hbm [shape: bf16[16,128], index: 9, kind: output, shape index: {}]  }
   0x1   :  { %15 = vsyncpa [#allocation6], 0 }
   0x2   :  { %16 = vsyncpa [#allocation9], 0 }
   0x3   :  { %17 = vsyncpa [#allocation12], 0 }
   0x4   :  { %18 = vsyncpa [#allocation4], 0  ;;  %s1998_s30 = smov [#allocation5]   ;;  %s1812_s13 = scalar_lea.hbm %s2221_s1, 1536 }
   0x5   :  { %s36_s10 = sshll.u32 %s1998_s30, 4  ;;  %p1813_p0 = scmp.ne.s32.totalorder %s2221_s1, %s1812_s13  ;;  %s37_s10 = int_to_ptr.vmem [resolvable:$true] %s36_s10 }
   0x6   :  { %p1816_p1 = scmp.lt.u32.totalorder %s1812_s13, %s2221_s1 }
   0x8   :  { %p1818_p2 = pnand %p1816_p1, %p1813_p0 }
   0xa   :  { %1821 = shalt.err (!%p1818_p2)
}
   0xb   :  { %s1822_s18 = scalar_lea.vmem %s37_s10, 1536  ;;  %p1827_p4 = scmp.lt.s32.totalorder %s37_s10, %s37_s10 }
   0xc   :  { %p1823_p3 = scmp.ne.s32.totalorder %s37_s10, %s1822_s18  ;;  %p1828_p5 = scmp.lt.s32.totalorder %s1822_s18, %s1822_s18 }
   0xe   :  { %p1829_p6 = por %p1828_p5, %p1827_p4 }
  0x10   :  { %p1830_p7 = pnand %p1829_p6, %p1823_p3 }
  0x12   :  { %1833 = shalt.err (!%p1830_p7)
}
  0x13   :  { %s1999_s19 = smov 768   ;;  %s2000_s20 = smov 48  }
  0x14   :  { %42 = dma.hbm_to_vmem [thread:$0]  %s2221_s1, 1536, %s37_s10, [#allocation6], %s1999_s19, %s1999_s19, %s2000_s20  }
  0x15   :  { %s2001_s23 = smov [#allocation8]   ;;  %s1834_s27 = scalar_lea.hbm %s2223_s3, 256 }
  0x16   :  { %s60_s24 = sshll.u32 %s2001_s23, 4  ;;  %p1835_p8 = scmp.ne.s32.totalorder %s2223_s3, %s1834_s27  ;;  %s61_s24 = int_to_ptr.vmem [resolvable:$true] %s60_s24 }
  0x17   :  { %p1838_p9 = scmp.lt.u32.totalorder %s1834_s27, %s2223_s3 }
  0x19   :  { %p1840_p10 = pnand %p1838_p9, %p1835_p8 }
  0x1b   :  { %1843 = shalt.err (!%p1840_p10)
}
  0x1c   :  { %s1844_s12 = scalar_lea.vmem %s61_s24, 256  ;;  %p1849_p12 = scmp.lt.s32.totalorder %s61_s24, %s61_s24 }
  0x1d   :  { %p1845_p11 = scmp.ne.s32.totalorder %s61_s24, %s1844_s12  ;;  %p1850_p13 = scmp.lt.s32.totalorder %s1844_s12, %s1844_s12 }
  0x1f   :  { %p1851_p0 = por %p1850_p13, %p1849_p12 }
  0x21   :  { %p1852_p1 = pnand %p1851_p0, %p1845_p11 }
  0x23   :  { %1855 = shalt.err (!%p1852_p1)
}
  0x24   :  { %s2002_s1 = smov 128   ;;  %s2003_s10 = smov 8  }
  0x25   :  { %66 = dma.hbm_to_vmem [thread:$0]  %s2223_s3, 256, %s61_s24, [#allocation9], %s2002_s1, %s2002_s1, %s2003_s10  }
  0x26   :  { %s2004_s15 = smov [#allocation11]   ;;  %s2005_s17 = smov [#allocation2]  }
  0x27   :  { %s84_s16 = sshll.u32 %s2004_s15, 4  ;;  %s24_s18 = sshll.u32 %s2005_s17, 4  ;;  %s85_s16 = int_to_ptr.vmem [resolvable:$true] %s84_s16  ;;  %s2093_s18 = int_to_ptr.vmem [resolvable:$true] %s24_s18 }
  0x28   :  { %s1856_s23 = scalar_lea.hbm %s2225_s5, 6144 }
  0x29   :  { %p1857_p2 = scmp.ne.s32.totalorder %s2225_s5, %s1856_s23  ;;  %p1860_p3 = scmp.lt.u32.totalorder %s1856_s23, %s2225_s5 }
  0x2b   :  { %p1862_p4 = pnand %p1860_p3, %p1857_p2 }
  0x2d   :  { %1865 = shalt.err (!%p1862_p4)
}
  0x2e   :  { %s1866_s3 = scalar_lea.vmem %s85_s16, 6144  ;;  %p1871_p6 = scmp.lt.s32.totalorder %s85_s16, %s85_s16 }
  0x2f   :  { %p1867_p5 = scmp.ne.s32.totalorder %s85_s16, %s1866_s3  ;;  %p1872_p7 = scmp.lt.s32.totalorder %s1866_s3, %s1866_s3 }
  0x31   :  { %p1873_p8 = por %p1872_p7, %p1871_p6 }
  0x33   :  { %p1874_p9 = pnand %p1873_p8, %p1867_p5 }
  0x35   :  { %1877 = shalt.err (!%p1874_p9)
}
  0x36   :  { %s2006_s24 = smov 64   ;;  %s2007_s29 = smov 4  }
  0x37   :  { %90 = dma.hbm_to_vmem [thread:$0]  %s2225_s5, 6144, %s85_s16, [#allocation12], %s2006_s24, %s2006_s24, %s2007_s29  }
  0x38   :  { %s1878_s14 = scalar_lea.hbm %s2220_s0, 1536 }
  0x39   :  { %p1879_p10 = scmp.ne.s32.totalorder %s2220_s0, %s1878_s14  ;;  %p1882_p11 = scmp.lt.u32.totalorder %s1878_s14, %s2220_s0 }
  0x3b   :  { %p1884_p12 = pnand %p1882_p11, %p1879_p10 }
  0x3d   :  { %1887 = shalt.err (!%p1884_p12)
}
  0x3e   :  { %s1888_s23 = scalar_lea.vmem %s2093_s18, 1536  ;;  %p1893_p0 = scmp.lt.s32.totalorder %s2093_s18, %s2093_s18 }
  0x3f   :  { %p1889_p13 = scmp.ne.s32.totalorder %s2093_s18, %s1888_s23  ;;  %p1894_p1 = scmp.lt.s32.totalorder %s1888_s23, %s1888_s23 }
  0x41   :  { %p1895_p2 = por %p1894_p1, %p1893_p0 }
  0x43   :  { %p1896_p3 = pnand %p1895_p2, %p1889_p13 }
  0x45   :  { %1899 = shalt.err (!%p1896_p3)
}
  0x46   :  { %30 = dma.hbm_to_vmem [thread:$0]  %s2220_s0, 1536, %s2093_s18, [#allocation3], %s1999_s19, %s1999_s19, %s2000_s20  }
  0x47   :  { %s2008_s25 = smov [#allocation7]   ;;  %s2009_s27 = smov [#allocation10]  }
  0x48   :  { %s48_s26 = sshll.u32 %s2008_s25, 4  ;;  %s72_s28 = sshll.u32 %s2009_s27, 4  ;;  %s49_s26 = int_to_ptr.vmem [resolvable:$true] %s48_s26  ;;  %s2130_s28 = int_to_ptr.vmem [resolvable:$true] %s72_s28 }
  0x49   :  { %s1900_s11 = scalar_lea.hbm %s2222_s2, 256 }
  0x4a   :  { %p1901_p4 = scmp.ne.s32.totalorder %s2222_s2, %s1900_s11  ;;  %p1904_p5 = scmp.lt.u32.totalorder %s1900_s11, %s2222_s2 }
  0x4c   :  { %p1906_p6 = pnand %p1904_p5, %p1901_p4 }
  0x4e   :  { %1909 = shalt.err (!%p1906_p6)
}
  0x4f   :  { %s1910_s0 = scalar_lea.vmem %s49_s26, 256  ;;  %p1915_p8 = scmp.lt.s32.totalorder %s49_s26, %s49_s26 }
  0x50   :  { %p1911_p7 = scmp.ne.s32.totalorder %s49_s26, %s1910_s0  ;;  %p1916_p9 = scmp.lt.s32.totalorder %s1910_s0, %s1910_s0 }
  0x52   :  { %p1917_p10 = por %p1916_p9, %p1915_p8 }
  0x54   :  { %p1918_p11 = pnand %p1917_p10, %p1911_p7 }
  0x56   :  { %1921 = shalt.err (!%p1918_p11)
}
  0x57   :  { %54 = dma.hbm_to_vmem [thread:$0]  %s2222_s2, 256, %s49_s26, [#allocation6], %s2002_s1, %s2002_s1, %s2003_s10  }
  0x58   :  { %s1922_s21 = scalar_lea.hbm %s2224_s4, 6144 }
  0x59   :  { %p1923_p12 = scmp.ne.s32.totalorder %s2224_s4, %s1922_s21  ;;  %p1926_p13 = scmp.lt.u32.totalorder %s1922_s21, %s2224_s4 }
  0x5b   :  { %p1928_p0 = pnand %p1926_p13, %p1923_p12 }
  0x5d   :  { %1931 = shalt.err (!%p1928_p0)
}
  0x5e   :  { %s1932_s25 = scalar_lea.vmem %s2130_s28, 6144  ;;  %p1937_p2 = scmp.lt.s32.totalorder %s2130_s28, %s2130_s28 }
  0x5f   :  { %p1933_p1 = scmp.ne.s32.totalorder %s2130_s28, %s1932_s25  ;;  %p1938_p3 = scmp.lt.s32.totalorder %s1932_s25, %s1932_s25 }
  0x61   :  { %p1939_p4 = por %p1938_p3, %p1937_p2 }
  0x63   :  { %p1940_p5 = pnand %p1939_p4, %p1933_p1 }
  0x65   :  { %1943 = shalt.err (!%p1940_p5)
}
  0x66   :  { %78 = dma.hbm_to_vmem [thread:$0]  %s2224_s4, 6144, %s2130_s28, [#allocation9], %s2006_s24, %s2006_s24, %s2007_s29  }
  0x67   :  { %s2010_s27 = smov [#allocation13]   ;;  %s1944_s12 = scalar_lea.hbm %s2226_s6, 512 }
  0x68   :  { %s96_s3 = sshll.u32 %s2010_s27, 4  ;;  %p1945_p6 = scmp.ne.s32.totalorder %s2226_s6, %s1944_s12  ;;  %s97_s3 = int_to_ptr.vmem [resolvable:$true] %s96_s3 }
  0x69   :  { %p1948_p7 = scmp.lt.u32.totalorder %s1944_s12, %s2226_s6 }
  0x6b   :  { %p1950_p8 = pnand %p1948_p7, %p1945_p6 }
  0x6d   :  { %1953 = shalt.err (!%p1950_p8)
}
  0x6e   :  { %s1954_s19 = scalar_lea.vmem %s97_s3, 512  ;;  %p1959_p10 = scmp.lt.s32.totalorder %s97_s3, %s97_s3 }
  0x6f   :  { %p1955_p9 = scmp.ne.s32.totalorder %s97_s3, %s1954_s19  ;;  %p1960_p11 = scmp.lt.s32.totalorder %s1954_s19, %s1954_s19 }
  0x71   :  { %p1961_p12 = por %p1960_p11, %p1959_p10 }
  0x73   :  { %p1962_p13 = pnand %p1961_p12, %p1955_p9 }
  0x75   :  { %1965 = shalt.err (!%p1962_p13)
}
  0x76   :  { %102 = dma.hbm_to_vmem [thread:$0]  %s2226_s6, 512, %s97_s3, [#allocation12], %s2002_s1, %s2002_s1, %s2003_s10  }
  0x77   :  { %1988 = dma.done.wait [#allocation3], 1536  }
  0x78   :  { %1989 = vsyncadd [#allocation3], 4294965760 }
  0x79   :  { %1990 = dma.done.wait [#allocation6], 1792  }
  0x7a   :  { %1991 = vsyncadd [#allocation6], 4294965504 }
  0x7b   :  { %1992 = dma.done.wait [#allocation9], 6400  }
  0x7c   :  { %1993 = vsyncadd [#allocation9], 4294960896 }
  0x7d   :  { %1994 = dma.done.wait [#allocation12], 6656  }
  0x7e   :  { %1995 = vsyncadd [#allocation12], 4294960640  ;;  %v1716_v0 = vld [vmem:[#allocation11 + $0x40] sm:$0xff]   ;;  %v1720_v4 = vld [vmem:[#allocation11 + $0x48] sm:$0xff]   ;;  %vm1192_vm0 = vcmask 1042432   ;;  %vm2011_vm1 = vmmov 1  }
  0x7f   :  { %v1717_v1 = vld [vmem:[#allocation11 + $0xc0] sm:$0xff]   ;;  %1521 = vmatprep.subr.bf16.mxu0 %v1716_v0  ;;  %v1721_v5 = vld [vmem:[#allocation11 + $0xc8] sm:$0xff]   ;;  %v1724_v8 = vld [vmem:[#allocation11 + $0x50] sm:$0xff]   ;;  %vm1185_vm3 = vcmask 220160   ;;  %vm1277_vm4 = vcmask 89088   ;;  %s2012_s17 = smov [#allocation14]  }
  0x80   :  { %v1718_v2 = vld [vmem:[#allocation11] sm:$0xff]   ;;  %1543 = vmatprep.subr.bf16.mxu1 %v1717_v1  ;;  %v1722_v6 = vld [vmem:[#allocation11 + $0x8] sm:$0xff]   ;;  %v1725_v9 = vld [vmem:[#allocation11 + $0xd0] sm:$0xff]   ;;  %s1394_s21 = sshll.u32 %s2012_s17, 4  ;;  %s1395_s21 = int_to_ptr.vmem [resolvable:$true] %s1394_s21 }
  0x81   :  { %v1719_v3 = vld [vmem:[#allocation11 + $0x80] sm:$0xff]   ;;  %1522 = vmatpush3.bf16.msra.mxu0 %v1718_v2  ;;  %v1723_v7 = vld [vmem:[#allocation11 + $0x88] sm:$0xff]   ;;  %v1726_v10 = vld [vmem:[#allocation11 + $0x10] sm:$0xff]   ;;  %s1966_s22 = scalar_lea.vmem %s1395_s21, 128  ;;  %p1971_p1 = scmp.lt.s32.totalorder %s1395_s21, %s1395_s21 }
  0x82   :  { %1544 = vmatpush3.bf16.msra.mxu1 %v1719_v3  ;;  %1523 = vmatprep.subr.bf16.mxu0 %v1720_v4  ;;  %v1727_v11 = vld [vmem:[#allocation11 + $0x90] sm:$0xff]   ;;  %v1728_v12 = vld [vmem:[#allocation11 + $0x58] sm:$0xff]   ;;  %v1732_v16 = vld [vmem:[#allocation11 + $0x60] sm:$0xff]   ;;  %p1967_p0 = scmp.ne.s32.totalorder %s1395_s21, %s1966_s22  ;;  %p1972_p2 = scmp.lt.s32.totalorder %s1966_s22, %s1966_s22 }
  0x83   :  { %1545 = vmatprep.subr.bf16.mxu1 %v1721_v5  ;;  %v1729_v13 = vld [vmem:[#allocation11 + $0xd8] sm:$0xff]   ;;  %v1733_v17 = vld [vmem:[#allocation11 + $0xe0] sm:$0xff]   ;;  %v1736_v20 = vld [vmem:[#allocation11 + $0x68] sm:$0xff]  }
  0x84   :  { %v1730_v14 = vld [vmem:[#allocation11 + $0x18] sm:$0xff]   ;;  %v1734_v18 = vld [vmem:[#allocation11 + $0x20] sm:$0xff]   ;;  %v1737_v21 = vld [vmem:[#allocation11 + $0xe8] sm:$0xff]   ;;  %p1973_p3 = por %p1972_p2, %p1971_p1 }
  0x85   :  { %1524 = vmatpush3.bf16.msra.mxu0 %v1722_v6  ;;  %v1731_v15 = vld [vmem:[#allocation11 + $0x98] sm:$0xff]   ;;  %v1735_v19 = vld [vmem:[#allocation11 + $0xa0] sm:$0xff]   ;;  %v1738_v22 = vld [vmem:[#allocation11 + $0x28] sm:$0xff]  }
  0x86   :  { %1546 = vmatpush3.bf16.msra.mxu1 %v1723_v7  ;;  %1525 = vmatprep.subr.bf16.mxu0 %v1724_v8  ;;  %v1739_v23 = vld [vmem:[#allocation11 + $0xa8] sm:$0xff]   ;;  %v1740_v24 = vld [vmem:[#allocation11 + $0x70] sm:$0xff]   ;;  %v1744_v28 = vld [vmem:[#allocation11 + $0x78] sm:$0xff]   ;;  %p1974_p4 = pnand %p1973_p3, %p1967_p0 }
  0x87   :  { %1547 = vmatprep.subr.bf16.mxu1 %v1725_v9  ;;  %v1741_v25 = vld [vmem:[#allocation11 + $0xf0] sm:$0xff]   ;;  %v1745_v29 = vld [vmem:[#allocation11 + $0xf8] sm:$0xff]   ;;  %v244_v32 = vld [vmem:[#allocation5 + $0x8] sm:$0xff] }
  0x88   :  { %v1742_v26 = vld [vmem:[#allocation11 + $0x30] sm:$0xff]   ;;  %v1746_v30 = vld [vmem:[#allocation11 + $0x38] sm:$0xff]   ;;  %v252_v36 = vld [vmem:[#allocation5 + $0x48] sm:$0xff] }
  0x89   :  { %1526 = vmatpush3.bf16.msra.mxu0 %v1726_v10  ;;  %v1743_v27 = vld [vmem:[#allocation11 + $0xb0] sm:$0xff]   ;;  %v1747_v31 = vld [vmem:[#allocation11 + $0xb8] sm:$0xff]   ;;  %v243_v37 = vld [vmem:[#allocation5] sm:$0xff] }
  0x8a   :  { %1548 = vmatpush3.bf16.msra.mxu1 %v1727_v11  ;;  %1527 = vmatprep.subr.bf16.mxu0 %v1728_v12  ;;  %v250_v33 = vld [vmem:[#allocation5 + $0x38] sm:$0xff]  ;;  %v249_v38 = vld [vmem:[#allocation5 + $0x30] sm:$0xff]  ;;  %v251_v42 = vld [vmem:[#allocation5 + $0x40] sm:$0xff] }
  0x8b   :  { %1549 = vmatprep.subr.bf16.mxu1 %v1729_v13  ;;  %v246_v34 = vld [vmem:[#allocation5 + $0x18] sm:$0xff]  ;;  %v256_v35 = vpack.c.bf16 %v250_v33, %v244_v32  ;;  %v255_v40 = vpack.c.bf16 %v249_v38, %v243_v37  ;;  %v245_v41 = vld [vmem:[#allocation5 + $0x10] sm:$0xff]  ;;  %v1748_v44 = vld [vmem:[#allocation11 + $0x140] sm:$0xff]  }
  0x8c   :  { %v258_v39 = vpack.c.bf16 %v252_v36, %v246_v34  ;;  %v257_v43 = vpack.c.bf16 %v251_v42, %v245_v41  ;;  %v1749_v45 = vld [vmem:[#allocation10 + $0x40] sm:$0xff]   ;;  %v1752_v48 = vld [vmem:[#allocation11 + $0x148] sm:$0xff]   ;;  %v1756_v52 = vld [vmem:[#allocation11 + $0x150] sm:$0xff]  }
  0x8d   :  { %1528 = vmatpush3.bf16.msra.mxu0 %v1730_v14  ;;  %677 = vmatprep.mubr.bf16.mxu0 %v256_v35  ;;  %v1750_v46 = vld [vmem:[#allocation11 + $0x100] sm:$0xff]   ;;  %v1753_v49 = vld [vmem:[#allocation10 + $0x48] sm:$0xff]   ;;  %v1757_v53 = vld [vmem:[#allocation10 + $0x50] sm:$0xff]  }
  0x8e   :  { %1550 = vmatpush3.bf16.msra.mxu1 %v1731_v15  ;;  %1529 = vmatprep.subr.bf16.mxu0 %v1732_v16  ;;  %v1751_v47 = vld [vmem:[#allocation10] sm:$0xff]   ;;  %v1754_v50 = vld [vmem:[#allocation11 + $0x108] sm:$0xff]   ;;  %v1758_v54 = vld [vmem:[#allocation11 + $0x110] sm:$0xff]  }
  0x8f   :  { %1551 = vmatprep.subr.bf16.mxu1 %v1733_v17  ;;  %718 = vmatprep.mubr.bf16.mxu1 %v258_v39  ;;  %v1755_v51 = vld [vmem:[#allocation10 + $0x8] sm:$0xff]   ;;  %v1759_v55 = vld [vmem:[#allocation10 + $0x10] sm:$0xff]   ;;  %v1760_v56 = vld [vmem:[#allocation11 + $0x158] sm:$0xff]  }
  0x90   :  { %v1761_v57 = vld [vmem:[#allocation10 + $0x58] sm:$0xff]   ;;  %v1764_v60 = vld [vmem:[#allocation11 + $0x160] sm:$0xff]   ;;  %v1768_v0 = vld [vmem:[#allocation11 + $0x168] sm:$0xff]  }
  0x91   :  { %1530 = vmatpush3.bf16.msra.mxu0 %v1734_v18  ;;  %v1762_v58 = vld [vmem:[#allocation11 + $0x118] sm:$0xff]   ;;  %v1765_v61 = vld [vmem:[#allocation10 + $0x60] sm:$0xff]   ;;  %v1769_v1 = vld [vmem:[#allocation10 + $0x68] sm:$0xff]  }
  0x92   :  { %1552 = vmatpush3.bf16.msra.mxu1 %v1735_v19  ;;  %1531 = vmatprep.subr.bf16.mxu0 %v1736_v20  ;;  %v1763_v59 = vld [vmem:[#allocation10 + $0x18] sm:$0xff]   ;;  %v1766_v62 = vld [vmem:[#allocation11 + $0x120] sm:$0xff]   ;;  %v1770_v2 = vld [vmem:[#allocation11 + $0x128] sm:$0xff]  }
  0x93   :  { %1553 = vmatprep.subr.bf16.mxu1 %v1737_v21  ;;  %v1767_v63 = vld [vmem:[#allocation10 + $0x20] sm:$0xff]   ;;  %v1771_v3 = vld [vmem:[#allocation10 + $0x28] sm:$0xff]   ;;  %v1772_v4 = vld [vmem:[#allocation11 + $0x170] sm:$0xff]  }
  0x94   :  { %v1773_v5 = vld [vmem:[#allocation10 + $0x70] sm:$0xff]   ;;  %v1776_v8 = vld [vmem:[#allocation11 + $0x178] sm:$0xff]   ;;  %v248_v12 = vld [vmem:[#allocation5 + $0x28] sm:$0xff] }
  0x95   :  { %1532 = vmatpush3.bf16.msra.mxu0 %v1738_v22  ;;  %v1774_v6 = vld [vmem:[#allocation11 + $0x130] sm:$0xff]   ;;  %v1777_v9 = vld [vmem:[#allocation10 + $0x78] sm:$0xff]   ;;  %v130_v14 = vld [vmem:[#allocation2 + $0x8] sm:$0xff] }
  0x96   :  { %1554 = vmatpush3.bf16.msra.mxu1 %v1739_v23  ;;  %1533 = vmatprep.subr.bf16.mxu0 %v1740_v24  ;;  %v1775_v7 = vld [vmem:[#allocation10 + $0x30] sm:$0xff]   ;;  %v1778_v10 = vld [vmem:[#allocation11 + $0x138] sm:$0xff]   ;;  %v247_v18 = vld [vmem:[#allocation5 + $0x20] sm:$0xff] }
  0x97   :  { %1555 = vmatprep.subr.bf16.mxu1 %v1741_v25  ;;  %v1779_v11 = vld [vmem:[#allocation10 + $0x38] sm:$0xff]   ;;  %v253_v19 = vld [vmem:[#allocation5 + $0x50] sm:$0xff]  ;;  %v129_v20 = vld [vmem:[#allocation2] sm:$0xff] }
  0x98   :  { %v254_v13 = vld [vmem:[#allocation5 + $0x58] sm:$0xff]  ;;  %v259_v21 = vpack.c.bf16 %v253_v19, %v247_v18  ;;  %v135_v22 = vld [vmem:[#allocation2 + $0x30] sm:$0xff]  ;;  %v1780_v24 = vld [vmem:[#allocation10 + $0xc0] sm:$0xff]  }
  0x99   :  { %1534 = vmatpush3.bf16.msra.mxu0 %v1742_v26  ;;  %v136_v15 = vld [vmem:[#allocation2 + $0x38] sm:$0xff]  ;;  %v260_v16 = vpack.c.bf16 %v254_v13, %v248_v12  ;;  %v141_v23 = vpack.c.bf16 %v135_v22, %v129_v20  ;;  %v1781_v25 = vld [vmem:[#allocation10 + $0x140] sm:$0xff]   ;;  %v1788_v32 = vld [vmem:[#allocation10 + $0xd0] sm:$0xff]  }
  0x9a   :  { %1556 = vmatpush3.bf16.msra.mxu1 %v1743_v27  ;;  %1535 = vmatprep.subr.bf16.mxu0 %v1744_v28  ;;  %v142_v17 = vpack.c.bf16 %v136_v15, %v130_v14  ;;  %v1782_v26 = vld [vmem:[#allocation10 + $0x80] sm:$0xff]   ;;  %v1784_v28 = vld [vmem:[#allocation10 + $0xc8] sm:$0xff]   ;;  %v1789_v33 = vld [vmem:[#allocation10 + $0x150] sm:$0xff]  }
  0x9b   :  { %1557 = vmatprep.subr.bf16.mxu1 %v1745_v29  ;;  %v1783_v27 = vld [vmem:[#allocation10 + $0x100] sm:$0xff]   ;;  %v1785_v29 = vld [vmem:[#allocation10 + $0x148] sm:$0xff]   ;;  %v1790_v34 = vld [vmem:[#allocation10 + $0x90] sm:$0xff]  }
  0x9c   :  { %v1791_v35 = vld [vmem:[#allocation10 + $0x110] sm:$0xff]   ;;  %v1792_v36 = vld [vmem:[#allocation10 + $0xd8] sm:$0xff]   ;;  %v1797_v41 = vld [vmem:[#allocation10 + $0x160] sm:$0xff]  }
  0x9d   :  { %1536 = vmatpush3.bf16.msra.mxu0 %v1746_v30  ;;  %v1786_v30 = vld [vmem:[#allocation10 + $0x88] sm:$0xff]   ;;  %v1793_v37 = vld [vmem:[#allocation10 + $0x158] sm:$0xff]   ;;  %v1798_v42 = vld [vmem:[#allocation10 + $0xa0] sm:$0xff]  }
  0x9e   :  { %1558 = vmatpush3.bf16.msra.mxu1 %v1747_v31  ;;  %1565 = vmatprep.subr.bf16.mxu0 %v1748_v44  ;;  %v1787_v31 = vld [vmem:[#allocation10 + $0x108] sm:$0xff]   ;;  %v1794_v38 = vld [vmem:[#allocation10 + $0x98] sm:$0xff]   ;;  %vm2182_vm2 = vmpackc.low %vm1192_vm0, %vm2011_vm1 }
  0x9f   :  { %1587 = vmatprep.subr.bf16.mxu1 %v1749_v45  ;;  %v1795_v39 = vld [vmem:[#allocation10 + $0x118] sm:$0xff]   ;;  %v1800_v44 = vld [vmem:[#allocation10 + $0xe8] sm:$0xff]   ;;  %v1179_v14 = vld [vmem:[#allocation7] sm:$0xff] }
  0xa0   :  { %678 = vmatmul.mubr.bf16.vlgmr.msra.gmra.mrb[0].mxu0 %v255_v40  ;;  %v1796_v40 = vld [vmem:[#allocation10 + $0xe0] sm:$0xff]   ;;  %v1801_v45 = vld [vmem:[#allocation10 + $0x168] sm:$0xff]   ;;  %v1273_v15 = vld [vmem:[#allocation8] sm:$0xff] }
  0xa1   :  { %719 = vmatmul.mubr.bf16.vlgmr.msra.gmra.mrb[0].mxu1 %v257_v43  ;;  %1566 = vmatpush3.bf16.msra.mxu0 %v1750_v46  ;;  %v1799_v43 = vld [vmem:[#allocation10 + $0x120] sm:$0xff]   ;;  %v1802_v46 = vld [vmem:[#allocation10 + $0xa8] sm:$0xff]  }
  0xa2   :  { %1588 = vmatpush3.bf16.msra.mxu1 %v1751_v47  ;;  %1567 = vmatprep.subr.bf16.mxu0 %v1752_v48  ;;  %v1803_v47 = vld [vmem:[#allocation10 + $0x128] sm:$0xff]   ;;  %v1804_v48 = vld [vmem:[#allocation10 + $0xf0] sm:$0xff]  }
  0xa3   :  { %1589 = vmatprep.subr.bf16.mxu1 %v1753_v49  ;;  %759 = vmatprep.mubr.bf16.mxu0 %v260_v16  ;;  %v1805_v49 = vld [vmem:[#allocation10 + $0x170] sm:$0xff]   ;;  %v1274_v16 = vld [vmem:[#allocation8 + $0x8] sm:$0xff] }
  0xa4   :  { %1088 = vmatprep.mubr.bf16.mxu1 %v142_v17  ;;  %v1180_v17 = vld [vmem:[#allocation7 + $0x8] sm:$0xff] }
  0xa5   :  { %1568 = vmatpush3.bf16.msra.mxu0 %v1754_v50  ;;  %v1806_v50 = vld [vmem:[#allocation10 + $0xb0] sm:$0xff]  }
  0xa6   :  { %1590 = vmatpush3.bf16.msra.mxu1 %v1755_v51  ;;  %1569 = vmatprep.subr.bf16.mxu0 %v1756_v52  ;;  %v1807_v51 = vld [vmem:[#allocation10 + $0x130] sm:$0xff]  }
  0xa7   :  { %1591 = vmatprep.subr.bf16.mxu1 %v1757_v53  ;;  %v1808_v53 = vld [vmem:[#allocation10 + $0xf8] sm:$0xff]  }
  0xa9   :  { %1570 = vmatpush3.bf16.msra.mxu0 %v1758_v54  ;;  %v1809_v54 = vld [vmem:[#allocation10 + $0x178] sm:$0xff]  }
  0xaa   :  { %1592 = vmatpush3.bf16.msra.mxu1 %v1759_v55  ;;  %1571 = vmatprep.subr.bf16.mxu0 %v1760_v56  ;;  %v1810_v55 = vld [vmem:[#allocation10 + $0xb8] sm:$0xff]  }
  0xab   :  { %1593 = vmatprep.subr.bf16.mxu1 %v1761_v57  ;;  %v1811_v56 = vld [vmem:[#allocation10 + $0x138] sm:$0xff]  }
  0xac   :  { %v132_v57 = vld [vmem:[#allocation2 + $0x18] sm:$0xff] }
  0xad   :  { %1572 = vmatpush3.bf16.msra.mxu0 %v1762_v58  ;;  %v138_v58 = vld [vmem:[#allocation2 + $0x48] sm:$0xff] }
  0xae   :  { %1594 = vmatpush3.bf16.msra.mxu1 %v1763_v59  ;;  %1573 = vmatprep.subr.bf16.mxu0 %v1764_v60  ;;  %v144_v59 = vpack.c.bf16 %v138_v58, %v132_v57  ;;  %v134_v60 = vld [vmem:[#allocation2 + $0x28] sm:$0xff] }
  0xaf   :  { %1595 = vmatprep.subr.bf16.mxu1 %v1765_v61  ;;  %v140_v61 = vld [vmem:[#allocation2 + $0x58] sm:$0xff] }
  0xb1   :  { %1574 = vmatpush3.bf16.msra.mxu0 %v1766_v62  ;;  %v131_v62 = vld [vmem:[#allocation2 + $0x10] sm:$0xff] }
  0xb2   :  { %1596 = vmatpush3.bf16.msra.mxu1 %v1767_v63  ;;  %1575 = vmatprep.subr.bf16.mxu0 %v1768_v0  ;;  %v146_v63 = vpack.c.bf16 %v140_v61, %v134_v60  ;;  %v137_v0 = vld [vmem:[#allocation2 + $0x40] sm:$0xff] }
  0xb3   :  { %1597 = vmatprep.subr.bf16.mxu1 %v1769_v1  ;;  %v133_v1 = vld [vmem:[#allocation2 + $0x20] sm:$0xff] }
  0xb5   :  { %1576 = vmatpush3.bf16.msra.mxu0 %v1770_v2  ;;  %v139_v2 = vld [vmem:[#allocation2 + $0x50] sm:$0xff] }
  0xb6   :  { %1598 = vmatpush3.bf16.msra.mxu1 %v1771_v3  ;;  %1577 = vmatprep.subr.bf16.mxu0 %v1772_v4  ;;  %v143_v3 = vpack.c.bf16 %v137_v0, %v131_v62  ;;  %v145_v4 = vpack.c.bf16 %v139_v2, %v133_v1 }
  0xb7   :  { %1599 = vmatprep.subr.bf16.mxu1 %v1773_v5  ;;  %v1181_v5 = vld [vmem:[#allocation13] sm:$0xff] }
  0xb9   :  { %1578 = vmatpush3.bf16.msra.mxu0 %v1774_v6  ;;  %v1182_v6 = vld [vmem:[#allocation13 + $0x8] sm:$0xff] }
  0xba   :  { %1600 = vmatpush3.bf16.msra.mxu1 %v1775_v7  ;;  %1579 = vmatprep.subr.bf16.mxu0 %v1776_v8  ;;  %v1275_v7 = vld [vmem:[%s2227_s7] sm:$0xff]  ;;  %v1681_v8 = vpack.c.bf16 %v1182_v6, %v1181_v5 }
  0xbb   :  { %1601 = vmatprep.subr.bf16.mxu1 %v1777_v9  ;;  %v1276_v9 = vld [vmem:[%s2227_s7 + $0x8] sm:$0x7]  ;;  %v1511_v6 = vld [vmem:[%s2228_s8] ss:$0 sm:$0xff] }
  0xbc   :  { %v1691_v12 = vpack.c.bf16 %v1276_v9, %v1275_v7 }
  0xbd   :  { %1580 = vmatpush3.bf16.msra.mxu0 %v1778_v10  ;;  %v1183_v10 = vld [vmem:[#allocation13 + $0x10] sm:$0xff] }
  0xbe   :  { %1602 = vmatpush3.bf16.msra.mxu1 %v1779_v11  ;;  %1609 = vmatprep.subr.bf16.mxu0 %v1780_v24  ;;  %v1184_v11 = vld [vmem:[#allocation13 + $0x18] sm:$0x7] }
  0xbf   :  { %1631 = vmatprep.subr.bf16.mxu1 %v1781_v25  ;;  %v1685_v13 = vpack.c.bf16 %v1184_v11, %v1183_v10 }
  0xc0   :  { %760 = vmatmul.mubr.bf16.vlgmr.msra.gmra.mrb[4].mxu0 %v259_v21 }
  0xc1   :  { %1089 = vmatmul.mubr.bf16.vlgmr.msra.gmra.mrb[4].mxu1 %v141_v23  ;;  %1610 = vmatpush3.bf16.msra.mxu0 %v1782_v26 }
  0xc2   :  { %1632 = vmatpush3.bf16.msra.mxu1 %v1783_v27  ;;  %1611 = vmatprep.subr.bf16.mxu0 %v1784_v28 }
  0xc3   :  { %1633 = vmatprep.subr.bf16.mxu1 %v1785_v29  ;;  %1129 = vmatprep.mubr.bf16.mxu0 %v144_v59 }
  0xc4   :  { %1170 = vmatprep.mubr.bf16.mxu1 %v146_v63 }
  0xc5   :  { %1612 = vmatpush3.bf16.msra.mxu0 %v1786_v30 }
  0xc6   :  { %1634 = vmatpush3.bf16.msra.mxu1 %v1787_v31  ;;  %1613 = vmatprep.subr.bf16.mxu0 %v1788_v32 }
  0xc7   :  { %1635 = vmatprep.subr.bf16.mxu1 %v1789_v33 }
  0xc9   :  { %1614 = vmatpush3.bf16.msra.mxu0 %v1790_v34 }
  0xca   :  { %1636 = vmatpush3.bf16.msra.mxu1 %v1791_v35  ;;  %1615 = vmatprep.subr.bf16.mxu0 %v1792_v36 }
  0xcb   :  { %1637 = vmatprep.subr.bf16.mxu1 %v1793_v37 }
  0xcd   :  { %1616 = vmatpush3.bf16.msra.mxu0 %v1794_v38 }
  0xce   :  { %1638 = vmatpush3.bf16.msra.mxu1 %v1795_v39  ;;  %1617 = vmatprep.subr.bf16.mxu0 %v1796_v40 }
  0xcf   :  { %1639 = vmatprep.subr.bf16.mxu1 %v1797_v41 }
  0xd1   :  { %1618 = vmatpush3.bf16.msra.mxu0 %v1798_v42 }
  0xd2   :  { %1640 = vmatpush3.bf16.msra.mxu1 %v1799_v43  ;;  %1619 = vmatprep.subr.bf16.mxu0 %v1800_v44 }
  0xd3   :  { %1641 = vmatprep.subr.bf16.mxu1 %v1801_v45 }
  0xd5   :  { %1620 = vmatpush3.bf16.msra.mxu0 %v1802_v46 }
  0xd6   :  { %1642 = vmatpush3.bf16.msra.mxu1 %v1803_v47  ;;  %1621 = vmatprep.subr.bf16.mxu0 %v1804_v48 }
  0xd7   :  { %1643 = vmatprep.subr.bf16.mxu1 %v1805_v49 }
  0xd9   :  { %1622 = vmatpush3.bf16.msra.mxu0 %v1806_v50 }
  0xda   :  { %1644 = vmatpush3.bf16.msra.mxu1 %v1807_v51  ;;  %1623 = vmatprep.subr.bf16.mxu0 %v1808_v53 }
  0xdb   :  { %1645 = vmatprep.subr.bf16.mxu1 %v1809_v54 }
  0xdd   :  { %1624 = vmatpush3.bf16.msra.mxu0 %v1810_v55 }
  0xde   :  { %1646 = vmatpush3.bf16.msra.mxu1 %v1811_v56  ;;  %1693 = vmatprep.subr.msk.bf16.mxu0 %vm2182_vm2, %v1691_v12 }
  0xdf   :  { %1682 = vmatprep.subr.bf16.mxu1 %v1681_v8 }
  0xe0   :  { %1130 = vmatmul.mubr.bf16.vlgmr.msra.gmra.mrb[8].mxu0 %v143_v3 }
  0xe1   :  { %1171 = vmatmul.mubr.bf16.vlgmr.msra.gmra.mrb[8].mxu1 %v145_v4  ;;  %1696 = vmatpush3.bf16.msk.msra.mxu0 %vm2182_vm2, %v1691_v12 }
  0xe2   :  { %1671 = vmatprep.mubr.msk.f32.mxu1 %vm1185_vm3, %v1179_v14  ;;  %1684 = vmatpush3.bf16.msra.mxu1 %v1681_v8 }
  0xe3   :  { %1687 = vmatprep.subr.msk.bf16.mxu1 %vm2182_vm2, %v1685_v13  ;;  %1678 = vmatprep.mubr.msk.f32.mxu0 %vm1277_vm4, %v1273_v15 }
  0xe6   :  { %1690 = vmatpush3.bf16.msk.msra.mxu1 %vm2182_vm2, %v1685_v13 }
  0xe8   :  { %1679 = vmatmul.mubr.msk.f32.vlgmr.msra.gmra.mrb[12].mxu0 %vm1277_vm4, %v1274_v16 }
  0xe9   :  { %1672 = vmatmul.mubr.msk.f32.vlgmr.msra.gmra.mrb[12].mxu1 %vm1185_vm3, %v1180_v17 }
 0x173   :  { %v1537_v18 = vpop.f32.mrb[0].mxu0 }
 0x174   :  { %v1559_v19 = vpop.f32.mrb[0].mxu1  ;;  %v1538_v20 = vpop.f32.mrb[1].mxu0 }
 0x175   :  { %v1539_v21 = vadd.f32 %v1538_v20, %v1537_v18  ;;  %v1560_v22 = vpop.f32.mrb[1].mxu1  ;;  %v1540_v23 = vpop.f32.mrb[2].mxu0 }
 0x176   :  { %v1561_v24 = vadd.f32 %v1560_v22, %v1559_v19  ;;  %v1562_v25 = vpop.f32.mrb[2].mxu1  ;;  %v1541_v26 = vpop.f32.mrb[3].mxu0 }
 0x177   :  { %v1542_v27 = vadd.f32 %v1541_v26, %v1540_v23  ;;  %v1563_v28 = vpop.f32.mrb[3].mxu1 }
 0x178   :  { %v721_v29 = vadd.f32 %v1561_v24, %v1539_v21  ;;  %v1564_v30 = vadd.f32 %v1563_v28, %v1562_v25 }
 0x17a   :  { %v724_v31 = vadd.f32 %v1564_v30, %v1542_v27 }
 0x193   :  { %v1581_v32 = vpop.f32.mrb[4].mxu0 }
 0x194   :  { %v1603_v33 = vpop.f32.mrb[4].mxu1  ;;  %v1582_v34 = vpop.f32.mrb[5].mxu0 }
 0x195   :  { %v1583_v35 = vadd.f32 %v1582_v34, %v1581_v32  ;;  %v1604_v36 = vpop.f32.mrb[5].mxu1  ;;  %v1584_v37 = vpop.f32.mrb[6].mxu0 }
 0x196   :  { %v1605_v38 = vadd.f32 %v1604_v36, %v1603_v33  ;;  %v1606_v39 = vpop.f32.mrb[6].mxu1  ;;  %v1585_v40 = vpop.f32.mrb[7].mxu0 }
 0x197   :  { %v762_v41 = vadd.f32 %v1583_v35, %v721_v29  ;;  %v1586_v42 = vadd.f32 %v1585_v40, %v1584_v37  ;;  %v1607_v43 = vpop.f32.mrb[7].mxu1 }
 0x198   :  { %v1608_v44 = vadd.f32 %v1607_v43, %v1606_v39 }
 0x199   :  { %v1091_v45 = vadd.f32 %v1605_v38, %v762_v41  ;;  %v765_v46 = vadd.f32 %v1586_v42, %v724_v31 }
 0x19b   :  { %v1094_v47 = vadd.f32 %v1608_v44, %v765_v46 }
 0x1b3   :  { %v1625_v48 = vpop.f32.mrb[8].mxu0 }
 0x1b4   :  { %v1647_v49 = vpop.f32.mrb[8].mxu1  ;;  %v1626_v50 = vpop.f32.mrb[9].mxu0 }
 0x1b5   :  { %v1648_v51 = vpop.f32.mrb[9].mxu1  ;;  %v1627_v52 = vadd.f32 %v1626_v50, %v1625_v48  ;;  %v1628_v54 = vpop.f32.mrb[10].mxu0 }
 0x1b6   :  { %v1649_v53 = vadd.f32 %v1648_v51, %v1647_v49  ;;  %v1650_v55 = vpop.f32.mrb[10].mxu1  ;;  %v1629_v56 = vpop.f32.mrb[11].mxu0 }
 0x1b7   :  { %v1651_v57 = vpop.f32.mrb[11].mxu1  ;;  %v1132_v58 = vadd.f32 %v1627_v52, %v1091_v45  ;;  %v1630_v59 = vadd.f32 %v1629_v56, %v1628_v54 }
 0x1b8   :  { %v1652_v60 = vadd.f32 %v1651_v57, %v1650_v55 }
 0x1b9   :  { %v1135_v61 = vadd.f32 %v1630_v59, %v1094_v47  ;;  %v1173_v62 = vadd.f32 %v1649_v53, %v1132_v58 }
 0x1bb   :  { %v1176_v63 = vadd.f32 %v1652_v60, %v1135_v61  ;;  %v1680_v0 = vpop.f32.mrb[12].mxu0 }
 0x1bc   :  { %v1673_v1 = vpop.f32.mrb[12].mxu1  ;;  %v1353_v2 = vpop.f32.mrb[13].mxu0 }
 0x1bd   :  { %v1272_v3 = vadd.f32 %v1673_v1, %v1176_v63  ;;  %v1262_v4 = vpop.f32.mrb[13].mxu1 }
 0x1be   :  { %v1271_v5 = vadd.f32 %v1262_v4, %v1173_v62 }
 0x1bf   :  { %v1363_v7 = vadd.f32 %v1680_v0, %v1272_v3 }
 0x1c0   :  { %v1362_v8 = vadd.f32 %v1353_v2, %v1271_v5 }
 0x1c1   :  { %v1372_v9 = vadd.f32 %v1511_v6, %v1363_v7 }
 0x1c2   :  { %v1371_v10 = vadd.f32 %v1511_v6, %v1362_v8 }
 0x1c3   :  { %v1376_v11 = vmul.f32 0.01, %v1372_v9  ;;  %vm1374_vm5 = vcmp.ge.f32.partialorder %v1372_v9, 0.0 }
 0x1c4   :  { %v1375_v12 = vmul.f32 0.01, %v1371_v10  ;;  %vm1373_vm6 = vcmp.ge.f32.partialorder %v1371_v10, 0.0 }
 0x1c5   :  { %v1378_v13 = vsel %vm1374_vm5, %v1372_v9, %v1376_v11 }
 0x1c6   :  { %v1377_v14 = vsel %vm1373_vm6, %v1371_v10, %v1375_v12 }
 0x1c7   :  { %v1519_v15 = vpack.c.bf16 %v1378_v13, %v1377_v14 }
 0x1c9   :  { %1520 = vst [vmem:[#allocation14] sm:$0xff] %v1519_v15  }
 0x1ca   :  { %1977 = shalt.err (!%p1974_p4)
}
 0x1cb   :  { %s1978_s5 = scalar_lea.hbm %s2229_s9, 128 }
 0x1cc   :  { %p1979_p5 = scmp.ne.s32.totalorder %s2229_s9, %s1978_s5  ;;  %p1982_p6 = scmp.lt.u32.totalorder %s1978_s5, %s2229_s9 }
 0x1ce   :  { %p1984_p7 = pnand %p1982_p6, %p1979_p5 }
 0x1d0   :  { %1987 = shalt.err (!%p1984_p7)
}
 0x1d1   :  { %1400 = dma.vmem_to_hbm [thread:$0]  %s1395_s21, 128, %s2229_s9, [#allocation4], %s2006_s24, %s2006_s24, %s2007_s29  }
 0x1d2   :  { %1996 = dma.done.wait [#allocation4], 128  }
 0x1d3   :  { %1997 = vsyncadd [#allocation4], 4294967168 }
 0x1d4   :  { %1404 = vsyncpa [#allocation3], 1 }
 0x1d5   :  { %1405 = vsyncpa [#allocation6], 1 }
 0x1d6   :  { %1406 = vsyncpa [#allocation9], 1 }
 0x1d7   :  { %1407 = vsyncpa [#allocation12], 1 }
 0x1d8   :  { %1408 = vsyncpa [#allocation4], 1 }

</bundles_post_ra>
